<compile_context>
chip_gen: v7x
topology: tpu7x:2x2x1
jax: 0.10.0
libtpu: 0.0.40
codegen_flags: <defaults>
</compile_context>

<pallas_src>
import functools

import jax
import jax.numpy as jnp
from jax.experimental import pallas as pl
from jax.experimental.pallas import tpu as pltpu


_TARGET_TILE_BYTES = 4 << 20     # ~4 MiB tiles: measured roofline plateau
_MIN_SPLIT_TILE_BYTES = 1 << 20  # only split for megacore if tiles stay >= 1 MiB
_VMEM_BUDGET_BYTES = 40 << 20    # conservative: v7x has only 64 MiB VMEM per TC


# ---------------------------------------------------------------------------
# Single-pass kernel: full (C, HW) slab per batch block.
# ---------------------------------------------------------------------------
def _se_kernel(x_ref, w1t_ref, w2t_ref, o_ref):
    # x_ref: (Bt, C, HW); w1t_ref: (C, Cr); w2t_ref: (Cr, C)
    # Global average pool, accumulated in f32 regardless of input dtype.
    pooled = jnp.mean(x_ref[...].astype(jnp.float32), axis=-1)           # (Bt, C)
    h = jnp.maximum(
        jnp.dot(pooled, w1t_ref[...], preferred_element_type=jnp.float32), 0.0)
    s = jax.nn.sigmoid(
        jnp.dot(h, w2t_ref[...], preferred_element_type=jnp.float32))    # (Bt, C)
    o_ref[...] = (x_ref[...] * s[:, :, None].astype(x_ref.dtype)).astype(o_ref.dtype)


# ---------------------------------------------------------------------------
# Two-pass fallback kernels (HW-tiled; used when one slab overflows VMEM).
# ---------------------------------------------------------------------------
def _pool_excite_kernel(x_ref, w1t_ref, w2t_ref, s_ref, acc_ref, *, hw_total, t_hw):
    # Grid: (batch blocks [parallel], HW blocks [arbitrary, innermost]).
    hw_i = pl.program_id(1)

    @pl.when(hw_i == 0)
    def _():
        acc_ref[...] = jnp.zeros_like(acc_ref)

    xf = x_ref[...].astype(jnp.float32)                      # (Bt, C, t_hw)
    if hw_total % t_hw != 0:
        # Mask the padded tail of the last HW block so the mean stays exact.
        pos = hw_i * t_hw + jax.lax.broadcasted_iota(jnp.int32, xf.shape, 2)
        xf = jnp.where(pos < hw_total, xf, 0.0)
    acc_ref[...] += jnp.sum(xf, axis=-1)                     # (Bt, C) f32

    @pl.when(hw_i == pl.num_programs(1) - 1)
    def _():
        pooled = acc_ref[...] * (1.0 / float(hw_total))
        h = jnp.maximum(
            jnp.dot(pooled, w1t_ref[...], preferred_element_type=jnp.float32), 0.0)
        s = jax.nn.sigmoid(
            jnp.dot(h, w2t_ref[...], preferred_element_type=jnp.float32))
        s_ref[...] = s[:, :, None]                            # (Bt, C, 1) f32


def _rescale_kernel(x_ref, s_ref, o_ref):
    # x_ref: (Bt, C, t_hw); s_ref: (Bt, C, 1) -- broadcast along lanes is cheap.
    o_ref[...] = (x_ref[...] * s_ref[...].astype(x_ref.dtype)).astype(o_ref.dtype)


# ---------------------------------------------------------------------------
# Wrapper.
# ---------------------------------------------------------------------------
def _pick_batch_tile(B, bytes_per_batch_elem):
    cap = max(1, _TARGET_TILE_BYTES // max(1, bytes_per_batch_elem))
    bt = int(min(cap, B))
    # v7x megacore: prefer >= 2 grid steps over the 'parallel' batch axis, but
    # only when each tile stays >= 1 MiB (single-TC v5e/v6e gain ~nothing).
    if bt == B and B >= 2 and (B // 2) * bytes_per_batch_elem >= _MIN_SPLIT_TILE_BYTES:
        bt = (B + 1) // 2
    return bt


def se_block(x, w1, w2, *, _force_two_pass=False, _t_hw=None):
    """x: (B, C, H, W); w1: (Cr, C); w2: (C, Cr)  (PyTorch Linear layouts)."""
    B, C, H, W = x.shape
    HW = H * W
    Cr = w1.shape[0]
    x_flat = x.reshape(B, C, HW)

    # Pre-transpose the (tiny) weights so in-kernel contractions sit on lanes.
    w1_t = jnp.transpose(w1)   # (C, Cr)
    w2_t = jnp.transpose(w2)   # (Cr, C)

    itemsize = jnp.dtype(x.dtype).itemsize
    w_bytes = 2 * (C * Cr + Cr * C) * jnp.dtype(w1.dtype).itemsize  # double-buffered
    bytes_per_b = C * HW * itemsize

    bt = _pick_batch_tile(B, bytes_per_b)
    grid_b = -(-B // bt)        # padded tail block: rows are independent and its
                                # garbage outputs are never written back to HBM.
    sp_footprint = 4 * bt * bytes_per_b + w_bytes   # 2 bufs x (in + out) + weights

    if not _force_two_pass and sp_footprint <= _VMEM_BUDGET_BYTES:
        vmem_limit = int(min(max(sp_footprint + (4 << 20), 32 << 20), 48 << 20))
        cost = pl.CostEstimate(
            flops=2 * B * C * HW + 4 * B * C * Cr,
            transcendentals=B * C,
            bytes_accessed=2 * B * C * HW * itemsize + w_bytes,
        )
        out_flat = pl.pallas_call(
            _se_kernel,
            out_shape=jax.ShapeDtypeStruct((B, C, HW), x.dtype),
            grid_spec=pltpu.PrefetchScalarGridSpec(
                num_scalar_prefetch=0,
                grid=(grid_b,),
                in_specs=[
                    pl.BlockSpec((bt, C, HW), lambda b: (b, 0, 0)),  # streamed slab
                    pl.BlockSpec((C, Cr), lambda b: (0, 0)),         # fc1^T resident
                    pl.BlockSpec((Cr, C), lambda b: (0, 0)),         # fc2^T resident
                ],
                out_specs=pl.BlockSpec((bt, C, HW), lambda b: (b, 0, 0)),
            ),
            compiler_params=pltpu.CompilerParams(
                dimension_semantics=("parallel",),
                vmem_limit_bytes=vmem_limit,
            ),
            cost_estimate=cost,
        )(x_flat, w1_t, w2_t)
        return out_flat.reshape(B, C, H, W)

    # ------------------------------------------------------------------
    # Two-pass fallback: a single (C, HW) slab overflows the VMEM budget.
    # ------------------------------------------------------------------
    if _t_hw is not None:
        t_hw = int(_t_hw)
    else:
        t_hw = max(128, (_TARGET_TILE_BYTES // (C * itemsize)) // 128 * 128)
        t_hw = min(t_hw, HW)
    grid_hw = -(-HW // t_hw)
    fb_footprint = 4 * bt * C * t_hw * itemsize + w_bytes
    vmem_limit = int(min(max(fb_footprint + (4 << 20), 32 << 20), 48 << 20))

    # Pass 1: masked HW-tiled pooling + excitation MLP -> per-channel scales.
    scales = pl.pallas_call(
        functools.partial(_pool_excite_kernel, hw_total=HW, t_hw=t_hw),
        out_shape=jax.ShapeDtypeStruct((B, C, 1), jnp.float32),
        grid_spec=pltpu.PrefetchScalarGridSpec(
            num_scalar_prefetch=0,
            grid=(grid_b, grid_hw),
            in_specs=[
                pl.BlockSpec((bt, C, t_hw), lambda b, h: (b, 0, h)),
                pl.BlockSpec((C, Cr), lambda b, h: (0, 0)),
                pl.BlockSpec((Cr, C), lambda b, h: (0, 0)),
            ],
            out_specs=pl.BlockSpec((bt, C, 1), lambda b, h: (b, 0, 0)),
            scratch_shapes=[pltpu.VMEM((bt, C), jnp.float32)],
        ),
        compiler_params=pltpu.CompilerParams(
            dimension_semantics=("parallel", "arbitrary"),
            vmem_limit_bytes=vmem_limit,
        ),
    )(x_flat, w1_t, w2_t)

    # Pass 2: stream HW tiles and rescale.
    out_flat = pl.pallas_call(
        _rescale_kernel,
        out_shape=jax.ShapeDtypeStruct((B, C, HW), x.dtype),
        grid_spec=pltpu.PrefetchScalarGridSpec(
            num_scalar_prefetch=0,
            grid=(grid_b, grid_hw),
            in_specs=[
                pl.BlockSpec((bt, C, t_hw), lambda b, h: (b, 0, h)),
                pl.BlockSpec((bt, C, 1), lambda b, h: (b, 0, 0)),
            ],
            out_specs=pl.BlockSpec((bt, C, t_hw), lambda b, h: (b, 0, h)),
        ),
        compiler_params=pltpu.CompilerParams(
            dimension_semantics=("parallel", "parallel"),
            vmem_limit_bytes=vmem_limit,
        ),
    )(x_flat, scales)
    return out_flat.reshape(B, C, H, W)


def se_block_ref(x, w1, w2):
    """Pure-JAX reference mirroring the PyTorch module."""
    y = jnp.mean(x.astype(jnp.float32), axis=(2, 3))    # (B, C) adaptive avg pool
    y = jnp.maximum(y @ w1.T.astype(jnp.float32), 0.0)  # Linear(C -> C_r), ReLU
    y = jax.nn.sigmoid(y @ w2.T.astype(jnp.float32))    # Linear(C_r -> C), Sigmoid
    return x * y.astype(x.dtype)[:, :, None, None]


if __name__ == "__main__":
    key = jax.random.PRNGKey(0)

    # --- Test 1: default single-pass streaming path -----------------------
    B, C, H, W = 4, 32, 16, 16
    reduction = 16
    Cr = C // reduction
    kx, k1, k2, kx2 = jax.random.split(key, 4)

    x = jax.random.normal(kx, (B, C, H, W), dtype=jnp.float32)
    # Torch Linear layout: (out_features, in_features).
    w1 = jax.random.normal(k1, (Cr, C), dtype=jnp.float32) * (1.0 / jnp.sqrt(C))
    w2 = jax.random.normal(k2, (C, Cr), dtype=jnp.float32) * (1.0 / jnp.sqrt(Cr))

    out = jax.block_until_ready(se_block(x, w1, w2))
    ref = jax.block_until_ready(se_block_ref(x, w1, w2))
    assert out.shape == (B, C, H, W)
    assert jnp.max(jnp.abs(out - ref)) < 1e-5, "single-pass mismatch vs reference"

    # --- Test 2: two-pass fallback (HW-tiled, masked tail, padded blocks) ---
    B2, H2, W2 = 3, 13, 13          # HW = 169: exercises the masked tail block
    x2 = jax.random.normal(kx2, (B2, C, H2, W2), dtype=jnp.float32)
    out2 = jax.block_until_ready(
        se_block(x2, w1, w2, _force_two_pass=True, _t_hw=128))
    ref2 = jax.block_until_ready(se_block_ref(x2, w1, w2))
    assert out2.shape == (B2, C, H2, W2)
    assert jnp.max(jnp.abs(out2 - ref2)) < 1e-5, "two-pass mismatch vs reference"

    print("KERNEL_OK")
</pallas_src>

<mosaic_0001>
module attributes {stable_mosaic.version = 11 : i64} {
  func.func @_se_kernel(%arg0: i32, %arg1: memref<4x32x256xf32, #tpu.memory_space<vmem>>, %arg2: memref<32x2xf32, #tpu.memory_space<vmem>>, %arg3: memref<2x32xf32, #tpu.memory_space<vmem>>, %arg4: memref<4x32x256xf32, #tpu.memory_space<vmem>>) attributes {dimension_semantics = [#tpu.dimension_semantics<parallel>], iteration_bounds = array<i64: 1>, scalar_prefetch = 0 : i64, scratch_operands = 0 : i64, tpu.core_type = #tpu.core_type<tc>, window_params = [{transform_indices = @transform_0, window_bounds = array<i64: 4, 32, 256>}, {pipeline_mode = #tpu.pipeline_mode<synchronous>, transform_indices = @transform_1, window_bounds = array<i64: 32, 2>}, {pipeline_mode = #tpu.pipeline_mode<synchronous>, transform_indices = @transform_2, window_bounds = array<i64: 2, 32>}, {transform_indices = @transform_3, window_bounds = array<i64: 4, 32, 256>}]} {
    %c0 = arith.constant 0 : index
    %c0_0 = arith.constant 0 : index
    %c0_1 = arith.constant 0 : index
    %0 = vector.load %arg1[%c0, %c0_0, %c0_1] : memref<4x32x256xf32, #tpu.memory_space<vmem>>, vector<4x32x256xf32>
    %cst = arith.constant dense<0.000000e+00> : vector<4x32xf32>
    %1 = vector.multi_reduction <add>, %0, %cst [2] : vector<4x32x256xf32> to vector<4x32xf32>
    %cst_2 = arith.constant 2.560000e+02 : f32
    %2 = vector.broadcast %cst_2 : f32 to vector<4x32xf32>
    %3 = arith.divf %1, %2 : vector<4x32xf32>
    %c0_3 = arith.constant 0 : index
    %c0_4 = arith.constant 0 : index
    %4 = vector.load %arg2[%c0_3, %c0_4] : memref<32x2xf32, #tpu.memory_space<vmem>>, vector<32x2xf32>
    %cst_5 = arith.constant dense<0.000000e+00> : vector<4x2xf32>
    %5 = tpu.matmul %3, %4, %cst_5 {dimension_numbers = #tpu.dot_dimension_numbers<[1], [0], [0], [1], [0, 0, 1, 1], [], []>} : vector<4x32xf32>, vector<32x2xf32>, vector<4x2xf32> -> vector<4x2xf32>
    %cst_6 = arith.constant 0.000000e+00 : f32
    %6 = vector.broadcast %cst_6 : f32 to vector<4x2xf32>
    %7 = arith.maximumf %5, %6 : vector<4x2xf32>
    %c0_7 = arith.constant 0 : index
    %c0_8 = arith.constant 0 : index
    %8 = vector.load %arg3[%c0_7, %c0_8] : memref<2x32xf32, #tpu.memory_space<vmem>>, vector<2x32xf32>
    %cst_9 = arith.constant dense<0.000000e+00> : vector<4x32xf32>
    %9 = tpu.matmul %7, %8, %cst_9 {dimension_numbers = #tpu.dot_dimension_numbers<[1], [0], [0], [1], [0, 0, 1, 1], [], []>} : vector<4x2xf32>, vector<2x32xf32>, vector<4x32xf32> -> vector<4x32xf32>
    %10 = arith.negf %9 : vector<4x32xf32>
    %11 = math.exp %10 : vector<4x32xf32>
    %cst_10 = arith.constant 1.000000e+00 : f32
    %12 = vector.broadcast %cst_10 : f32 to vector<4x32xf32>
    %13 = arith.addf %12, %11 : vector<4x32xf32>
    %14 = arith.divf %12, %13 : vector<4x32xf32>
    %c0_11 = arith.constant 0 : index
    %c0_12 = arith.constant 0 : index
    %c0_13 = arith.constant 0 : index
    %15 = vector.load %arg1[%c0_11, %c0_12, %c0_13] : memref<4x32x256xf32, #tpu.memory_space<vmem>>, vector<4x32x256xf32>
    %16 = vector.shape_cast %14 : vector<4x32xf32> to vector<4x32x1xf32>
    %17 = vector.broadcast %16 : vector<4x32x1xf32> to vector<4x32x256xf32>
    %18 = arith.mulf %15, %17 : vector<4x32x256xf32>
    %c0_14 = arith.constant 0 : index
    %c0_15 = arith.constant 0 : index
    %c0_16 = arith.constant 0 : index
    %19 = vector.load %arg4[%c0_14, %c0_15, %c0_16] : memref<4x32x256xf32, #tpu.memory_space<vmem>>, vector<4x32x256xf32>
    tpu.vector_store %arg4[%c0_14, %c0_15, %c0_16], %18 {strides = array<i32>} : memref<4x32x256xf32, #tpu.memory_space<vmem>>, vector<4x32x256xf32>,
    return
  }
  func.func @transform_0(%arg0: i32) -> (i32, i32, i32) {
    %c0_i32 = arith.constant 0 : i32
    %c0_i32_0 = arith.constant 0 : i32
    %c0_i32_1 = arith.constant 0 : i32
    return %arg0, %c0_i32, %c0_i32_0 : i32, i32, i32
  }
  func.func @transform_1(%arg0: i32) -> (i32, i32) {
    %c0_i32 = arith.constant 0 : i32
    %c0_i32_0 = arith.constant 0 : i32
    %c0_i32_1 = arith.constant 0 : i32
    return %c0_i32, %c0_i32_0 : i32, i32
  }
  func.func @transform_2(%arg0: i32) -> (i32, i32) {
    %c0_i32 = arith.constant 0 : i32
    %c0_i32_0 = arith.constant 0 : i32
    %c0_i32_1 = arith.constant 0 : i32
    return %c0_i32, %c0_i32_0 : i32, i32
  }
  func.func @transform_3(%arg0: i32) -> (i32, i32, i32) {
    %c0_i32 = arith.constant 0 : i32
    %c0_i32_0 = arith.constant 0 : i32
    %c0_i32_1 = arith.constant 0 : i32
    return %arg0, %c0_i32, %c0_i32_0 : i32, i32, i32
  }
}

</mosaic_0001>

<bundles_post_ra>
// kernel: tpu_custom_call.1
= control target key start
LH: loop header
LB: loop body
LE: loop exit
PB: predicated region body
PF: predicated region fallthrough
CT: control target
= control target key end

     0   :  { %8 = vsyncpa [#allocation3], 0  ;;  %s867_s0 = inlined_call_operand.hbm [shape: f32[4,32,256], index: 0, kind: input, shape index: {}]   ;;  %s868_s1 = inlined_call_operand.vmem [shape: f32[32,2], index: 1, kind: input, shape index: {}]   ;;  %s869_s2 = inlined_call_operand.vmem [shape: f32[2,32], index: 2, kind: input, shape index: {}]   ;;  %s870_s3 = inlined_call_operand.hbm [shape: f32[4,32,256], index: 3, kind: output, shape index: {}]  }
   0x1   :  { %9 = vsyncpa [#allocation4], 0  ;;  %s644_s12 = smov [#allocation2]   ;;  %s596_s16 = scalar_lea.hbm %s867_s0, 4096 }
   0x2   :  { %s15_s13 = sshll.u32 %s644_s12, 4  ;;  %p597_p0 = scmp.ne.s32.totalorder %s867_s0, %s596_s16  ;;  %s16_s13 = int_to_ptr.vmem [resolvable:$true] %s15_s13 }
   0x3   :  { %p600_p1 = scmp.lt.u32.totalorder %s596_s16, %s867_s0 }
   0x5   :  { %p602_p2 = pnand %p600_p1, %p597_p0 }
   0x7   :  { %605 = shalt.err (!%p602_p2)
}
   0x8   :  { %s606_s21 = scalar_lea.vmem %s16_s13, 4096  ;;  %p611_p4 = scmp.lt.s32.totalorder %s16_s13, %s16_s13 }
   0x9   :  { %p607_p3 = scmp.ne.s32.totalorder %s16_s13, %s606_s21  ;;  %p612_p5 = scmp.lt.s32.totalorder %s606_s21, %s606_s21 }
   0xb   :  { %p613_p6 = por %p612_p5, %p611_p4 }
   0xd   :  { %p614_p7 = pnand %p613_p6, %p607_p3 }
   0xf   :  { %617 = shalt.err (!%p614_p7)
}
  0x10   :  { %s645_s22 = smov 256   ;;  %s646_s23 = smov 16  }
  0x11   :  { %21 = dma.hbm_to_vmem [thread:$0]  %s867_s0, 4096, %s16_s13, [#allocation3], %s645_s22, %s645_s22, %s646_s23  }
  0x12   :  { %640 = dma.done.wait [#allocation3], 4096  }
  0x13   :  { %641 = vsyncadd [#allocation3], 4294963200  ;;  %v686_v0 = vld [vmem:[#allocation2 + $0x40] sm:$0xff]  ;;  %v688_v1 = vld [vmem:[#allocation2 + $0x48] sm:$0xff]  ;;  %v647_v51 = vmov 0.0|0.0   ;;  %vm648_vm0 = vmmov 0   ;;  %v146_v62 = vlaneseq }
  0x14   :  { %v690_v2 = vld [vmem:[#allocation2] sm:$0xff]  ;;  %v73_v3 = vadd.f32 %v688_v1, %v686_v0  ;;  %v694_v4 = vld [vmem:[#allocation2 + $0x8] sm:$0xff]  ;;  %v696_v5 = vld [vmem:[#allocation2 + $0x50] sm:$0xff]  ;;  %579 = vmatprep.subr.bf16.mxu0 %v647_v51  ;;  %v649_v55 = vmov 0.0   ;;  %vm157_vm1 = vcmask 130112   ;;  %vm164_vm2 = vcmask 195712  }
  0x15   :  { %v698_v6 = vld [vmem:[#allocation2 + $0x58] sm:$0xff]  ;;  %v61_v7 = vadd.f32 %v694_v4, %v690_v2  ;;  %v702_v8 = vld [vmem:[#allocation2 + $0x10] sm:$0xff]  ;;  %v710_v12 = vld [vmem:[#allocation2 + $0x60] sm:$0xff]  ;;  %571 = vmatprep.mubr.msk.f32.mxu0 %vm648_vm0, %v649_v55  ;;  %574 = vmatprep.subr.mxu1 %v649_v55  ;;  %vm171_vm3 = vcmask 261312   ;;  %vm230_vm4 = vcmask 1041409   ;;  %vm232_vm5 = vcmask 1042434  }
  0x16   :  { %v704_v9 = vld [vmem:[#allocation2 + $0x18] sm:$0xff]  ;;  %74 = vadd.xlane.f32.xlu1 %v73_v3  ;;  %v76_v10 = vadd.f32 %v698_v6, %v696_v5  ;;  %v712_v13 = vld [vmem:[#allocation2 + $0x68] sm:$0xff]  ;;  %v714_v14 = vld [vmem:[#allocation2 + $0x20] sm:$0xff]  ;;  %576 = vmatprep.mubr.msk.f32.mxu1 %vm648_vm0, %v649_v55  ;;  %vm234_vm6 = vcmask 1043459   ;;  %vm236_vm7 = vcmask 261120   ;;  %vm315_vm8 = vcmask 1041408  }
  0x17   :  { %62 = vadd.xlane.f32.xlu0 %v61_v7  ;;  %v64_v11 = vadd.f32 %v704_v9, %v702_v8  ;;  %v716_v15 = vld [vmem:[#allocation2 + $0x28] sm:$0xff]  ;;  %v79_v16 = vadd.f32 %v712_v13, %v710_v12  ;;  %v722_v18 = vld [vmem:[#allocation2 + $0x90] sm:$0xff]  ;;  %v724_v19 = vld [vmem:[#allocation2 + $0x98] sm:$0xff]  ;;  %v147_v7 = vand.u32 127, %v146_v62  ;;  %vm311_vm9 = vcmask 15360  }
  0x18   :  { %v67_v17 = vadd.f32 %v716_v15, %v714_v14  ;;  %v726_v20 = vld [vmem:[#allocation2 + $0x80] sm:$0xff]  ;;  %v728_v21 = vld [vmem:[#allocation2 + $0x88] sm:$0xff]  ;;  %v88_v22 = vadd.f32 %v724_v19, %v722_v18  ;;  %v734_v24 = vld [vmem:[#allocation2 + $0x70] sm:$0xff] }
  0x19   :  { %v85_v23 = vadd.f32 %v728_v21, %v726_v20  ;;  %v736_v25 = vld [vmem:[#allocation2 + $0x78] sm:$0xff]  ;;  %v738_v26 = vld [vmem:[#allocation2 + $0x30] sm:$0xff]  ;;  %v746_v30 = vld [vmem:[#allocation2 + $0xc0] sm:$0xff] }
  0x1a   :  { %77 = vadd.xlane.f32.xlu1 %v76_v10  ;;  %v740_v27 = vld [vmem:[#allocation2 + $0x38] sm:$0xff]  ;;  %v82_v28 = vadd.f32 %v736_v25, %v734_v24  ;;  %v748_v31 = vld [vmem:[#allocation2 + $0xc8] sm:$0xff]  ;;  %v750_v32 = vld [vmem:[#allocation2 + $0xa0] sm:$0xff]  ;;  %v794_v10 = vshrl.u32 %v146_v62, 7 }
  0x1b   :  { %65 = vadd.xlane.f32.xlu0 %v64_v11  ;;  %v70_v29 = vadd.f32 %v740_v27, %v738_v26  ;;  %v752_v33 = vld [vmem:[#allocation2 + $0xa8] sm:$0xff]  ;;  %v97_v34 = vadd.f32 %v748_v31, %v746_v30  ;;  %v758_v36 = vld [vmem:[#allocation2 + $0xb0] sm:$0xff]  ;;  %v760_v37 = vld [vmem:[#allocation2 + $0xb8] sm:$0xff]  ;;  %v152_v11 = vadd.s32 4294967288, %v147_v7 }
  0x1c   :  { %v91_v35 = vadd.f32 %v752_v33, %v750_v32  ;;  %v762_v38 = vld [vmem:[#allocation2 + $0xd0] sm:$0xff]  ;;  %v764_v39 = vld [vmem:[#allocation2 + $0xd8] sm:$0xff]  ;;  %v94_v40 = vadd.f32 %v760_v37, %v758_v36  ;;  %v774_v44 = vld [vmem:[#allocation2 + $0xe0] sm:$0xff] }
  0x1d   :  { %874 = vst [vmem:[#allocation8_spill] sm:$0xff] %v764_v39  ;;  %v100_v41 = vadd.f32 %v764_v39, %v762_v38  ;;  %v770_v42 = vld [vmem:[#allocation2 + $0xf0] sm:$0xff]  ;;  %v772_v43 = vld [vmem:[#allocation2 + $0xf8] sm:$0xff]  ;;  %v776_v45 = vld [vmem:[#allocation2 + $0xe8] sm:$0xff] }
  0x1e   :  { %80 = vadd.xlane.f32.xlu1 %v79_v16  ;;  %875 = vst [vmem:[#allocation9_spill] sm:$0xff] %v770_v42  ;;  %876 = vst [vmem:[#allocation10_spill] sm:$0xff] %v772_v43  ;;  %v106_v46 = vadd.f32 %v772_v43, %v770_v42  ;;  %v103_v47 = vadd.f32 %v776_v45, %v774_v44  ;;  %v126_v48 = vld [vmem:[%s868_s1] sm:$0xff]  ;;  %v127_v49 = vld [vmem:[%s868_s1 + $0x8] sm:$0xff] }
  0x1f   :  { %68 = vadd.xlane.f32.xlu0 %v67_v17  ;;  %v580_v50 = vpack.c.bf16 %v127_v49, %v126_v48  ;;  %v128_v52 = vld [vmem:[%s868_s1 + $0x10] sm:$0xff]  ;;  %v129_v53 = vld [vmem:[%s868_s1 + $0x18] sm:$0xff]  ;;  %v159_v17 = vadd.s32 4294967280, %v147_v7 }
  0x20   :  { %v583_v54 = vpack.c.bf16 %v129_v53, %v128_v52 }
  0x21   :  { %581 = vmatpush3.bf16.msra.mxu0 %v580_v50 }
  0x22   :  { %89 = vadd.xlane.f32.xlu1 %v88_v22  ;;  %582 = vmatprep.subr.bf16.mxu0 %v647_v51 }
  0x23   :  { %86 = vadd.xlane.f32.xlu0 %v85_v23  ;;  %v166_v23 = vadd.s32 4294967272, %v147_v7 }
  0x25   :  { %584 = vmatpush3.bf16.msra.mxu0 %v583_v54  ;;  %v169_v52 = vsub.s32 %v166_v23, %v794_v10 }
  0x26   :  { %83 = vadd.xlane.f32.xlu1 %v82_v28  ;;  %v150_v28 = vsub.s32 %v147_v7, %v794_v10 }
  0x27   :  { %71 = vadd.xlane.f32.xlu0 %v70_v29 }
  0x2a   :  { %98 = vadd.xlane.f32.xlu1 %v97_v34  ;;  %v155_v34 = vsub.s32 %v152_v11, %v794_v10 }
  0x2b   :  { %92 = vadd.xlane.f32.xlu0 %v91_v35 }
  0x2e   :  { %95 = vadd.xlane.f32.xlu1 %v94_v40 }
  0x2f   :  { %101 = vadd.xlane.f32.xlu0 %v100_v41 }
  0x32   :  { %107 = vadd.xlane.f32.xlu1 %v106_v46  ;;  %v162_v46 = vsub.s32 %v159_v17, %v794_v10 }
  0x33   :  { %104 = vadd.xlane.f32.xlu0 %v103_v47 }
  0xa3   :  { %v75_v56 = vpop.xlane.xlu1 %74 }
  0xa4   :  { %v63_v57 = vpop.xlane.xlu0 %62  ;;  %v114_v29 = vmul.f32 0.00390625, %v75_v56 }
  0xa5   :  { %v110_v54 = vmul.f32 0.00390625, %v63_v57 }
  0xa6   :  { %v176_v56 = vrot.slane %v114_v29, %v150_v28 }
  0xa7   :  { %v78_v58 = vpop.xlane.xlu1 %77  ;;  %v151_v23 = vrot.slane %v110_v54, %v150_v28 }
  0xa8   :  { %v66_v59 = vpop.xlane.xlu0 %65  ;;  %v115_v35 = vmul.f32 0.00390625, %v78_v58 }
  0xa9   :  { %v111_v41 = vmul.f32 0.00390625, %v66_v59 }
  0xaa   :  { %v180_v7 = vrot.slane %v115_v35, %v155_v34 }
  0xab   :  { %v81_v60 = vpop.xlane.xlu1 %80  ;;  %v156_v59 = vrot.slane %v111_v41, %v155_v34 }
  0xac   :  { %v69_v61 = vpop.xlane.xlu0 %68  ;;  %v116_v47 = vmul.f32 0.00390625, %v81_v60 }
  0xad   :  { %v112_v48 = vmul.f32 0.00390625, %v69_v61 }
  0xae   :  { %v185_v11 = vrot.slane %v116_v47, %v162_v46 }
  0xaf   :  { %v90_v63 = vpop.xlane.xlu1 %89  ;;  %v163_v17 = vrot.slane %v112_v48, %v162_v46 }
  0xb0   :  { %v87_v3 = vpop.xlane.xlu0 %86  ;;  %v119_v50 = vmul.f32 0.00390625, %v90_v63 }
  0xb1   :  { %v118_v51 = vmul.f32 0.00390625, %v87_v3 }
  0xb2   :  { %v199_v43 = vrot.slane %v119_v50, %v155_v34 }
  0xb3   :  { %v84_v16 = vpop.xlane.xlu1 %83  ;;  %v195_v63 = vrot.slane %v118_v51, %v150_v28 }
  0xb4   :  { %v72_v22 = vpop.xlane.xlu0 %71  ;;  %v117_v53 = vmul.f32 0.00390625, %v84_v16 }
  0xb5   :  { %v113_v55 = vmul.f32 0.00390625, %v72_v22  ;;  %v181_v22 = vsel %vm157_vm1, %v180_v7, %v176_v56  ;;  %v200_v51 = vsel %vm157_vm1, %v199_v43, %v195_v63 }
  0xb6   :  { %v190_v3 = vrot.slane %v117_v53, %v169_v52  ;;  %v186_v41 = vsel %vm164_vm2, %v185_v11, %v181_v22 }
  0xb7   :  { %v99_v40 = vpop.xlane.xlu1 %98  ;;  %v170_v16 = vrot.slane %v113_v55, %v169_v52 }
  0xb8   :  { %v93_v49 = vpop.xlane.xlu0 %92  ;;  %v122_v57 = vmul.f32 0.00390625, %v99_v40  ;;  %v191_v53 = vsel %vm171_vm3, %v190_v3, %v186_v41  ;;  %v435_v41 = vsub.s32 2, %v794_v10 }
  0xb9   :  { %v120_v62 = vmul.f32 0.00390625, %v93_v49  ;;  %v158_v49 = vsel %vm157_vm1, %v156_v59, %v151_v23 }
  0xba   :  { %v165_v50 = vsel %vm164_vm2, %v163_v17, %v158_v49  ;;  %v214_v55 = vrot.slane %v122_v57, %v150_v28  ;;  %v397_v57 = vsub.s32 0, %v794_v10 }
  0xbb   :  { %v96_v58 = vpop.xlane.xlu1 %95  ;;  %v204_v39 = vrot.slane %v120_v62, %v162_v46  ;;  %v172_v54 = vsel %vm171_vm3, %v170_v16, %v165_v50 }
  0xbc   :  { %v121_v60 = vmul.f32 0.00390625, %v96_v58  ;;  %v102_v61 = vpop.xlane.xlu0 %101  ;;  %v231_v43 = vsel %vm230_vm4, %v191_v53, %v172_v54 }
  0xbd   :  { %v123_v42 = vmul.f32 0.00390625, %v102_v61  ;;  %v205_v62 = vsel %vm164_vm2, %v204_v39, %v200_v51  ;;  %v310_v39 = vld [vmem:[%s869_s2] sm:$0x3]  ;;  %s650_s2 = smov [#allocation5]  }
  0xbe   :  { %v209_v29 = vrot.slane %v121_v60, %v169_v52  ;;  %575 = vmatpush3.msk.msra.mxu1 %vm315_vm8, %v310_v39  ;;  %s540_s7 = sshll.u32 %s650_s2, 4  ;;  %s541_s7 = int_to_ptr.vmem [resolvable:$true] %s540_s7 }
  0xbf   :  { %v108_v35 = vpop.xlane.xlu1 %107  ;;  %v218_v47 = vrot.slane %v123_v42, %v155_v34  ;;  %s618_s8 = scalar_lea.vmem %s541_s7, 4096  ;;  %p623_p9 = scmp.lt.s32.totalorder %s541_s7, %s541_s7 }
  0xc0   :  { %v105_v48 = vpop.xlane.xlu0 %104  ;;  %v125_v58 = vmul.f32 0.00390625, %v108_v35  ;;  %v210_v7 = vsel %vm171_vm3, %v209_v29, %v205_v62  ;;  %v416_v35 = vsub.s32 1, %v794_v10  ;;  %p619_p8 = scmp.ne.s32.totalorder %s541_s7, %s618_s8  ;;  %p624_p10 = scmp.lt.s32.totalorder %s618_s8, %s618_s8 }
  0xc1   :  { %v124_v40 = vmul.f32 0.00390625, %v105_v48  ;;  %v219_v42 = vsel %vm157_vm1, %v218_v47, %v214_v55  ;;  %v233_v17 = vsel %vm232_vm5, %v210_v7, %v231_v43  ;;  %v454_v48 = vsub.s32 3, %v794_v10 }
  0xc2   :  { %v228_v56 = vrot.slane %v125_v58, %v169_v52  ;;  %p625_p11 = por %p624_p10, %p623_p9 }
  0xc3   :  { %v223_v59 = vrot.slane %v124_v40, %v162_v46 }
  0xc4   :  { %p626_p12 = pnand %p625_p11, %p619_p8 }
  0xc5   :  { %v224_v34 = vsel %vm164_vm2, %v223_v59, %v219_v42 }
  0xc6   :  { %v229_v11 = vsel %vm171_vm3, %v228_v56, %v224_v34 }
  0xc7   :  { %v235_v60 = vsel %vm234_vm6, %v229_v11, %v233_v17 }
  0xc8   :  { %572 = vmatmul.mubr.msk.f32.vlgmr.msra.gmra.mrb[0].mxu0 %vm236_vm7, %v235_v60 }
 0x19b   :  { %v305_v28 = vpop.f32.mrb[0].mxu0 }
 0x19c   :  { %v309_v46 = vmax.f32 %v305_v28, 0.0  ;;  %v573_v52 = vpop.f32.mrb[1].mxu0 }
 0x19e   :  { %577 = vmatmul.mubr.msk.f32.vlgmr.msra.gmra.mrb[0].mxu1 %vm311_vm9, %v309_v46 }
 0x271   :  { %v385_v61 = vpop.f32.mrb[0].mxu1 }
 0x272   :  { %v555_v63 = vmul.f32 -1.442695, %v385_v61  ;;  %v578_v3 = vpop.f32.mrb[1].mxu1 }
 0x273   :  { %v879_v3 = vld [vmem:[#allocation10_spill] sm:$0xff] }
 0x274   :  { %592 = vpow2.f32 %v555_v63  ;;  %v878_v63 = vld [vmem:[#allocation9_spill] sm:$0xff] }
 0x27e   :  { %v593_v23 = vpop.eup %592 }
 0x27f   :  { %v392_v16 = vadd.f32 1.0, %v593_v23 }
 0x281   :  { %594 = vrcp.f32 %v392_v16 }
 0x28b   :  { %v595_v22 = vpop.eup %594 }
 0x28c   :  { %v398_v29 = vrot.slane %v595_v22, %v397_v57  ;;  %v417_v49 = vrot.slane %v595_v22, %v416_v35  ;;  %v436_v47 = vrot.slane %v595_v22, %v435_v41  ;;  %v455_v58 = vrot.slane %v595_v22, %v454_v48 }
 0x28e   :  { %404 = vbcast.lane.b32.xlu1 %v398_v29, 264  ;;  %400 = vbcast.lane.b32.xlu0 %v398_v29, 256 }
 0x292   :  { %408 = vbcast.lane.b32.xlu1 %v398_v29, 272  ;;  %419 = vbcast.lane.b32.xlu0 %v417_v49, 256 }
 0x296   :  { %412 = vbcast.lane.b32.xlu1 %v398_v29, 280  ;;  %427 = vbcast.lane.b32.xlu0 %v417_v49, 272 }
 0x29a   :  { %423 = vbcast.lane.b32.xlu1 %v417_v49, 264  ;;  %438 = vbcast.lane.b32.xlu0 %v436_v47, 256 }
 0x29e   :  { %431 = vbcast.lane.b32.xlu1 %v417_v49, 280  ;;  %446 = vbcast.lane.b32.xlu0 %v436_v47, 272 }
 0x2a2   :  { %442 = vbcast.lane.b32.xlu1 %v436_v47, 264  ;;  %457 = vbcast.lane.b32.xlu0 %v455_v58, 256 }
 0x2a6   :  { %450 = vbcast.lane.b32.xlu1 %v436_v47, 280  ;;  %465 = vbcast.lane.b32.xlu0 %v455_v58, 272 }
 0x2aa   :  { %461 = vbcast.lane.b32.xlu1 %v455_v58, 264 }
 0x2ae   :  { %469 = vbcast.lane.b32.xlu1 %v455_v58, 280 }
 0x300   :  { %v405_v50 = vpop.permute.xlu1 %404  ;;  %v401_v51 = vpop.permute.xlu0 %400 }
 0x301   :  { %v473_v53 = vmul.f32 %v405_v50, %v702_v8  ;;  %v474_v40 = vmul.f32 %v405_v50, %v704_v9  ;;  %v471_v54 = vmul.f32 %v401_v51, %v690_v2  ;;  %v472_v55 = vmul.f32 %v401_v51, %v694_v4 }
 0x303   :  { %505 = vst [vmem:[#allocation5 + $0x10] sm:$0xff] %v473_v53  ;;  %506 = vst [vmem:[#allocation5 + $0x18] sm:$0xff] %v474_v40 }
 0x304   :  { %503 = vst [vmem:[#allocation5] sm:$0xff] %v471_v54  ;;  %504 = vst [vmem:[#allocation5 + $0x8] sm:$0xff] %v472_v55  ;;  %v409_v10 = vpop.permute.xlu1 %408  ;;  %v420_v62 = vpop.permute.xlu0 %419 }
 0x305   :  { %v475_v56 = vmul.f32 %v409_v10, %v714_v14  ;;  %v476_v7 = vmul.f32 %v409_v10, %v716_v15  ;;  %v479_v59 = vmul.f32 %v420_v62, %v686_v0  ;;  %v480_v8 = vmul.f32 %v420_v62, %v688_v1 }
 0x307   :  { %507 = vst [vmem:[#allocation5 + $0x20] sm:$0xff] %v475_v56  ;;  %508 = vst [vmem:[#allocation5 + $0x28] sm:$0xff] %v476_v7 }
 0x308   :  { %511 = vst [vmem:[#allocation5 + $0x40] sm:$0xff] %v479_v59  ;;  %512 = vst [vmem:[#allocation5 + $0x48] sm:$0xff] %v480_v8  ;;  %v413_v2 = vpop.permute.xlu1 %412  ;;  %v428_v4 = vpop.permute.xlu0 %427 }
 0x309   :  { %v477_v9 = vmul.f32 %v413_v2, %v738_v26  ;;  %v478_v42 = vmul.f32 %v413_v2, %v740_v27  ;;  %v483_v34 = vmul.f32 %v428_v4, %v710_v12  ;;  %v484_v14 = vmul.f32 %v428_v4, %v712_v13 }
 0x30b   :  { %509 = vst [vmem:[#allocation5 + $0x30] sm:$0xff] %v477_v9  ;;  %510 = vst [vmem:[#allocation5 + $0x38] sm:$0xff] %v478_v42 }
 0x30c   :  { %515 = vst [vmem:[#allocation5 + $0x60] sm:$0xff] %v483_v34  ;;  %516 = vst [vmem:[#allocation5 + $0x68] sm:$0xff] %v484_v14  ;;  %v424_v0 = vpop.permute.xlu1 %423  ;;  %v439_v1 = vpop.permute.xlu0 %438 }
 0x30d   :  { %v481_v15 = vmul.f32 %v424_v0, %v696_v5  ;;  %v482_v43 = vmul.f32 %v424_v0, %v698_v6  ;;  %v487_v11 = vmul.f32 %v439_v1, %v726_v20  ;;  %v488_v26 = vmul.f32 %v439_v1, %v728_v21 }
 0x30f   :  { %513 = vst [vmem:[#allocation5 + $0x50] sm:$0xff] %v481_v15  ;;  %514 = vst [vmem:[#allocation5 + $0x58] sm:$0xff] %v482_v43 }
 0x310   :  { %519 = vst [vmem:[#allocation5 + $0x80] sm:$0xff] %v487_v11  ;;  %520 = vst [vmem:[#allocation5 + $0x88] sm:$0xff] %v488_v26  ;;  %v432_v12 = vpop.permute.xlu1 %431  ;;  %v447_v13 = vpop.permute.xlu0 %446 }
 0x311   :  { %v485_v27 = vmul.f32 %v432_v12, %v734_v24  ;;  %v486_v17 = vmul.f32 %v432_v12, %v736_v25  ;;  %v491_v60 = vmul.f32 %v447_v13, %v750_v32  ;;  %v492_v5 = vmul.f32 %v447_v13, %v752_v33 }
 0x313   :  { %517 = vst [vmem:[#allocation5 + $0x70] sm:$0xff] %v485_v27  ;;  %518 = vst [vmem:[#allocation5 + $0x78] sm:$0xff] %v486_v17 }
 0x314   :  { %523 = vst [vmem:[#allocation5 + $0xa0] sm:$0xff] %v491_v60  ;;  %524 = vst [vmem:[#allocation5 + $0xa8] sm:$0xff] %v492_v5  ;;  %v443_v6 = vpop.permute.xlu1 %442  ;;  %v458_v20 = vpop.permute.xlu0 %457 }
 0x315   :  { %v489_v21 = vmul.f32 %v443_v6, %v722_v18  ;;  %v490_v39 = vmul.f32 %v443_v6, %v724_v19  ;;  %v495_v28 = vmul.f32 %v458_v20, %v746_v30  ;;  %v496_v24 = vmul.f32 %v458_v20, %v748_v31  ;;  %v877_v31 = vld [vmem:[#allocation8_spill] sm:$0xff] }
 0x317   :  { %521 = vst [vmem:[#allocation5 + $0x90] sm:$0xff] %v489_v21  ;;  %522 = vst [vmem:[#allocation5 + $0x98] sm:$0xff] %v490_v39 }
 0x318   :  { %527 = vst [vmem:[#allocation5 + $0xc0] sm:$0xff] %v495_v28  ;;  %528 = vst [vmem:[#allocation5 + $0xc8] sm:$0xff] %v496_v24  ;;  %v451_v25 = vpop.permute.xlu1 %450  ;;  %v466_v32 = vpop.permute.xlu0 %465 }
 0x319   :  { %v493_v33 = vmul.f32 %v451_v25, %v758_v36  ;;  %v494_v46 = vmul.f32 %v451_v25, %v760_v37  ;;  %v499_v52 = vmul.f32 %v466_v32, %v774_v44  ;;  %v500_v18 = vmul.f32 %v466_v32, %v776_v45 }
 0x31b   :  { %525 = vst [vmem:[#allocation5 + $0xb0] sm:$0xff] %v493_v33  ;;  %526 = vst [vmem:[#allocation5 + $0xb8] sm:$0xff] %v494_v46 }
 0x31c   :  { %531 = vst [vmem:[#allocation5 + $0xe0] sm:$0xff] %v499_v52  ;;  %532 = vst [vmem:[#allocation5 + $0xe8] sm:$0xff] %v500_v18  ;;  %v462_v19 = vpop.permute.xlu1 %461 }
 0x31d   :  { %v497_v30 = vmul.f32 %v462_v19, %v762_v38  ;;  %v498_v61 = vmul.f32 %v462_v19, %v877_v31 }
 0x31f   :  { %529 = vst [vmem:[#allocation5 + $0xd0] sm:$0xff] %v497_v30  ;;  %530 = vst [vmem:[#allocation5 + $0xd8] sm:$0xff] %v498_v61 }
 0x320   :  { %v470_v36 = vpop.permute.xlu1 %469 }
 0x321   :  { %v501_v37 = vmul.f32 %v470_v36, %v878_v63  ;;  %v502_v44 = vmul.f32 %v470_v36, %v879_v3 }
 0x323   :  { %533 = vst [vmem:[#allocation5 + $0xf0] sm:$0xff] %v501_v37  ;;  %534 = vst [vmem:[#allocation5 + $0xf8] sm:$0xff] %v502_v44 }
 0x324   :  { %629 = shalt.err (!%p626_p12)
}
 0x325   :  { %s630_s11 = scalar_lea.hbm %s870_s3, 4096 }
 0x326   :  { %p631_p13 = scmp.ne.s32.totalorder %s870_s3, %s630_s11  ;;  %p634_p0 = scmp.lt.u32.totalorder %s630_s11, %s870_s3 }
 0x328   :  { %p636_p1 = pnand %p634_p0, %p631_p13 }
 0x32a   :  { %639 = shalt.err (!%p636_p1)
}
 0x32b   :  { %546 = dma.vmem_to_hbm [thread:$0]  %s541_s7, 4096, %s870_s3, [#allocation4], %s645_s22, %s645_s22, %s646_s23  }
 0x32c   :  { %642 = dma.done.wait [#allocation4], 4096  }
 0x32d   :  { %643 = vsyncadd [#allocation4], 4294963200 }
 0x32e   :  { %550 = vsyncpa [#allocation3], 1 }
 0x32f   :  { %551 = vsyncpa [#allocation4], 1 }

</bundles_post_ra>
